<compile_context>
chip_gen: v7x
topology: tpu7x:2x2x1
jax: 0.10.0
libtpu: 0.0.40
codegen_flags: <defaults>
</compile_context>

<pallas_src>
import functools

import jax
import jax.numpy as jnp
from jax.experimental import pallas as pl
from jax.experimental.pallas import tpu as pltpu

LANE = 128
SUBLANE = 8


def _round_up(x, m):
    return ((x + m - 1) // m) * m


def simple_ckp_kernel(x_ref, y_ref, rowmask_ref,
                      w1_ref, b1_ref, w2_ref, b2_ref,
                      w3_ref, b3_ref, w4_ref, b4_ref,
                      loss_ref, acc_ref,
                      *, num_classes, inv_num_valid):
    i = pl.program_id(0)

    @pl.when(i == 0)
    def _():
        acc_ref[...] = jnp.zeros_like(acc_ref)

    # ---- 4 chained Linear layers: bf16 MXU operands, f32 accumulation,
    #      f32 bias add / epilogue (v5e VPU/EUP have no bf16) ----
    h = x_ref[...].astype(jnp.bfloat16)
    h = jnp.dot(h, w1_ref[...], preferred_element_type=jnp.float32) + b1_ref[...]
    h = jnp.dot(h.astype(jnp.bfloat16), w2_ref[...],
                preferred_element_type=jnp.float32) + b2_ref[...]
    h = jnp.dot(h.astype(jnp.bfloat16), w3_ref[...],
                preferred_element_type=jnp.float32) + b3_ref[...]
    logits = jnp.dot(h.astype(jnp.bfloat16), w4_ref[...],
                     preferred_element_type=jnp.float32) + b4_ref[...]   # (TB, Hp) f32

    # ---- cross-entropy with integer targets (f32), masking padded classes/rows ----
    col = jax.lax.broadcasted_iota(jnp.int32, logits.shape, 1)           # (TB, Hp)
    valid_col = col < num_classes
    masked_logits = jnp.where(valid_col, logits, jnp.float32(-1e30))     # exclude pad cols
    m = jnp.max(masked_logits, axis=-1, keepdims=True)                   # (TB, 1)
    lse = m + jnp.log(jnp.sum(jnp.exp(masked_logits - m), axis=-1, keepdims=True))
    onehot = (col == y_ref[...]).astype(jnp.float32)                     # labels < num_classes
    true_logit = jnp.sum(onehot * logits, axis=-1, keepdims=True)        # (TB, 1)
    per_example = (lse - true_logit) * rowmask_ref[...]                  # zero padded rows

    acc_ref[...] += jnp.sum(per_example, keepdims=True)                  # running sum (1,1)
    # Final value is correct after the last grid step; cheap (1,1) store each step.
    loss_ref[...] = acc_ref[...] * jnp.float32(inv_num_valid)


def simple_ckp_forward(x, y, params):
    """x: (B, H) f32, y: (B,) int32, params: dict of w{i} (H,H) pre-transposed, b{i} (H,)."""
    B, H = x.shape
    Hp = max(LANE, _round_up(H, LANE))                 # lane-dense feature dim
    TB = LANE if B > LANE else _round_up(B, SUBLANE)   # batch tile (multiple of 8)
    Bp = _round_up(B, TB)
    num_tiles = Bp // TB

    x_pad = jnp.zeros((Bp, Hp), jnp.float32).at[:B, :H].set(x.astype(jnp.float32))
    y_pad = jnp.zeros((Bp, 1), jnp.int32).at[:B, 0].set(y.astype(jnp.int32))
    rowmask = jnp.zeros((Bp, 1), jnp.float32).at[:B, :].set(1.0)

    args = [x_pad, y_pad, rowmask]
    in_specs = [
        pl.BlockSpec((TB, Hp), lambda i: (i, 0)),
        pl.BlockSpec((TB, 1), lambda i: (i, 0)),
        pl.BlockSpec((TB, 1), lambda i: (i, 0)),
    ]
    for li in (1, 2, 3, 4):
        # weights in bf16 (halves HBM->VMEM DMA, matches MXU native dtype); zero-padded
        w = jnp.zeros((Hp, Hp), jnp.bfloat16).at[:H, :H].set(
            params[f"w{li}"].astype(jnp.bfloat16))
        b = jnp.zeros((1, Hp), jnp.float32).at[0, :H].set(
            params[f"b{li}"].astype(jnp.float32))
        args += [w, b]
        in_specs += [pl.BlockSpec((Hp, Hp), lambda i: (0, 0)),
                     pl.BlockSpec((1, Hp), lambda i: (0, 0))]

    kernel = functools.partial(simple_ckp_kernel,
                               num_classes=H, inv_num_valid=1.0 / B)

    loss = pl.pallas_call(
        kernel,
        out_shape=jax.ShapeDtypeStruct((1, 1), jnp.float32),
        grid_spec=pltpu.PrefetchScalarGridSpec(
            num_scalar_prefetch=0,
            grid=(num_tiles,),
            in_specs=in_specs,
            out_specs=pl.BlockSpec((1, 1), lambda i: (0, 0)),
            scratch_shapes=[pltpu.VMEM((1, 1), jnp.float32)]),
        compiler_params=pltpu.CompilerParams(
            # batch axis carries the shared loss accumulator -> sequential
            dimension_semantics=("arbitrary",)),
    )(*args)
    return loss[0, 0]


def init_params(key, hidden_dim):
    """Deterministic init mimicking torch.nn.Linear default (uniform +/- 1/sqrt(fan_in))."""
    params = {}
    bound = 1.0 / (hidden_dim ** 0.5)
    for i in (1, 2, 3, 4):
        key, kw, kb = jax.random.split(key, 3)
        # stored pre-transposed: (in, out) so kernel does x @ W + b
        params[f"w{i}"] = jax.random.uniform(
            kw, (hidden_dim, hidden_dim), jnp.float32, -bound, bound)
        params[f"b{i}"] = jax.random.uniform(
            kb, (hidden_dim,), jnp.float32, -bound, bound)
    return params


def reference_forward(x, y, params):
    """Pure-JAX reference using the same bf16 matmul operands / f32 accumulation."""
    h = x.astype(jnp.float32)
    for i in (1, 2, 3, 4):
        w = params[f"w{i}"].astype(jnp.bfloat16)
        h = jnp.dot(h.astype(jnp.bfloat16), w,
                    preferred_element_type=jnp.float32) + params[f"b{i}"]
    lse = jax.scipy.special.logsumexp(h, axis=-1)
    true_logit = jnp.take_along_axis(h, y[:, None], axis=-1)[:, 0]
    return jnp.mean(lse - true_logit)


if __name__ == "__main__":
    batch, hidden_dim = 8, 32
    key = jax.random.PRNGKey(0)
    kx, ky, kp = jax.random.split(key, 3)

    x = jax.random.normal(kx, (batch, hidden_dim), jnp.float32)
    y = jax.random.randint(ky, (batch,), 0, hidden_dim, jnp.int32)
    params = init_params(kp, hidden_dim)

    loss = simple_ckp_forward(x, y, params)
    jax.block_until_ready(loss)

    ref = reference_forward(x, y, params)
    assert jnp.allclose(loss, ref, atol=1e-4, rtol=1e-4), (loss, ref)
    print("KERNEL_OK")
</pallas_src>

<mosaic_0001>
module attributes {stable_mosaic.version = 11 : i64} {
  func.func @simple_ckp_kernel(%arg0: i32, %arg1: memref<8x128xf32, #tpu.memory_space<vmem>>, %arg2: memref<8x1xi32, #tpu.memory_space<vmem>>, %arg3: memref<8x1xf32, #tpu.memory_space<vmem>>, %arg4: memref<128x128xbf16, #tpu.memory_space<vmem>>, %arg5: memref<1x128xf32, #tpu.memory_space<vmem>>, %arg6: memref<128x128xbf16, #tpu.memory_space<vmem>>, %arg7: memref<1x128xf32, #tpu.memory_space<vmem>>, %arg8: memref<128x128xbf16, #tpu.memory_space<vmem>>, %arg9: memref<1x128xf32, #tpu.memory_space<vmem>>, %arg10: memref<128x128xbf16, #tpu.memory_space<vmem>>, %arg11: memref<1x128xf32, #tpu.memory_space<vmem>>, %arg12: memref<1x1xf32, #tpu.memory_space<vmem>>, %arg13: memref<1x1xf32, #tpu.memory_space<vmem>>) attributes {dimension_semantics = [#tpu.dimension_semantics<arbitrary>], iteration_bounds = array<i64: 1>, scalar_prefetch = 0 : i64, scratch_operands = 1 : i64, tpu.core_type = #tpu.core_type<tc>, window_params = [{transform_indices = @transform_0, window_bounds = array<i64: 8, 128>}, {transform_indices = @transform_1, window_bounds = array<i64: 8, 1>}, {transform_indices = @transform_2, window_bounds = array<i64: 8, 1>}, {pipeline_mode = #tpu.pipeline_mode<synchronous>, transform_indices = @transform_3, window_bounds = array<i64: 128, 128>}, {pipeline_mode = #tpu.pipeline_mode<synchronous>, transform_indices = @transform_4, window_bounds = array<i64: 1, 128>}, {pipeline_mode = #tpu.pipeline_mode<synchronous>, transform_indices = @transform_5, window_bounds = array<i64: 128, 128>}, {pipeline_mode = #tpu.pipeline_mode<synchronous>, transform_indices = @transform_6, window_bounds = array<i64: 1, 128>}, {pipeline_mode = #tpu.pipeline_mode<synchronous>, transform_indices = @transform_7, window_bounds = array<i64: 128, 128>}, {pipeline_mode = #tpu.pipeline_mode<synchronous>, transform_indices = @transform_8, window_bounds = array<i64: 1, 128>}, {pipeline_mode = #tpu.pipeline_mode<synchronous>, transform_indices = @transform_9, window_bounds = array<i64: 128, 128>}, {pipeline_mode = #tpu.pipeline_mode<synchronous>, transform_indices = @transform_10, window_bounds = array<i64: 1, 128>}, {pipeline_mode = #tpu.pipeline_mode<synchronous>, transform_indices = @transform_11, window_bounds = array<i64: 1, 1>}]} {
    %c0_i32 = arith.constant 0 : i32
    %0 = arith.cmpi eq, %arg0, %c0_i32 : i32
    %1 = arith.extui %0 : i1 to i32
    %c0_i32_0 = arith.constant 0 : i32
    %2 = arith.cmpi ne, %1, %c0_i32_0 : i32
    scf.if %2 {
      %cst_39 = arith.constant 0.000000e+00 : f32
      %65 = vector.broadcast %cst_39 : f32 to vector<1x1xf32>
      %c0_40 = arith.constant 0 : index
      %c0_41 = arith.constant 0 : index
      %66 = vector.load %arg13[%c0_40, %c0_41] : memref<1x1xf32, #tpu.memory_space<vmem>>, vector<1x1xf32>
      tpu.vector_store %arg13[%c0_40, %c0_41], %65 {strides = array<i32>} : memref<1x1xf32, #tpu.memory_space<vmem>>, vector<1x1xf32>,
    } else {
    }
    %c0 = arith.constant 0 : index
    %c0_1 = arith.constant 0 : index
    %3 = vector.load %arg1[%c0, %c0_1] : memref<8x128xf32, #tpu.memory_space<vmem>>, vector<8x128xf32>
    %4 = arith.truncf %3 : vector<8x128xf32> to vector<8x128xbf16>
    %c0_2 = arith.constant 0 : index
    %c0_3 = arith.constant 0 : index
    %5 = vector.load %arg4[%c0_2, %c0_3] : memref<128x128xbf16, #tpu.memory_space<vmem>>, vector<128x128xbf16>
    %cst = arith.constant dense<0.000000e+00> : vector<8x128xf32>
    %6 = tpu.matmul %4, %5, %cst {dimension_numbers = #tpu.dot_dimension_numbers<[1], [0], [0], [1], [0, 0, 1, 1], [], []>} : vector<8x128xbf16>, vector<128x128xbf16>, vector<8x128xf32> -> vector<8x128xf32>
    %c0_4 = arith.constant 0 : index
    %c0_5 = arith.constant 0 : index
    %7 = vector.load %arg5[%c0_4, %c0_5] : memref<1x128xf32, #tpu.memory_space<vmem>>, vector<1x128xf32>
    %8 = vector.broadcast %7 : vector<1x128xf32> to vector<8x128xf32>
    %9 = arith.addf %6, %8 : vector<8x128xf32>
    %10 = arith.truncf %9 : vector<8x128xf32> to vector<8x128xbf16>
    %c0_6 = arith.constant 0 : index
    %c0_7 = arith.constant 0 : index
    %11 = vector.load %arg6[%c0_6, %c0_7] : memref<128x128xbf16, #tpu.memory_space<vmem>>, vector<128x128xbf16>
    %cst_8 = arith.constant dense<0.000000e+00> : vector<8x128xf32>
    %12 = tpu.matmul %10, %11, %cst_8 {dimension_numbers = #tpu.dot_dimension_numbers<[1], [0], [0], [1], [0, 0, 1, 1], [], []>} : vector<8x128xbf16>, vector<128x128xbf16>, vector<8x128xf32> -> vector<8x128xf32>
    %c0_9 = arith.constant 0 : index
    %c0_10 = arith.constant 0 : index
    %13 = vector.load %arg7[%c0_9, %c0_10] : memref<1x128xf32, #tpu.memory_space<vmem>>, vector<1x128xf32>
    %14 = vector.broadcast %13 : vector<1x128xf32> to vector<8x128xf32>
    %15 = arith.addf %12, %14 : vector<8x128xf32>
    %16 = arith.truncf %15 : vector<8x128xf32> to vector<8x128xbf16>
    %c0_11 = arith.constant 0 : index
    %c0_12 = arith.constant 0 : index
    %17 = vector.load %arg8[%c0_11, %c0_12] : memref<128x128xbf16, #tpu.memory_space<vmem>>, vector<128x128xbf16>
    %cst_13 = arith.constant dense<0.000000e+00> : vector<8x128xf32>
    %18 = tpu.matmul %16, %17, %cst_13 {dimension_numbers = #tpu.dot_dimension_numbers<[1], [0], [0], [1], [0, 0, 1, 1], [], []>} : vector<8x128xbf16>, vector<128x128xbf16>, vector<8x128xf32> -> vector<8x128xf32>
    %c0_14 = arith.constant 0 : index
    %c0_15 = arith.constant 0 : index
    %19 = vector.load %arg9[%c0_14, %c0_15] : memref<1x128xf32, #tpu.memory_space<vmem>>, vector<1x128xf32>
    %20 = vector.broadcast %19 : vector<1x128xf32> to vector<8x128xf32>
    %21 = arith.addf %18, %20 : vector<8x128xf32>
    %22 = arith.truncf %21 : vector<8x128xf32> to vector<8x128xbf16>
    %c0_16 = arith.constant 0 : index
    %c0_17 = arith.constant 0 : index
    %23 = vector.load %arg10[%c0_16, %c0_17] : memref<128x128xbf16, #tpu.memory_space<vmem>>, vector<128x128xbf16>
    %cst_18 = arith.constant dense<0.000000e+00> : vector<8x128xf32>
    %24 = tpu.matmul %22, %23, %cst_18 {dimension_numbers = #tpu.dot_dimension_numbers<[1], [0], [0], [1], [0, 0, 1, 1], [], []>} : vector<8x128xbf16>, vector<128x128xbf16>, vector<8x128xf32> -> vector<8x128xf32>
    %c0_19 = arith.constant 0 : index
    %c0_20 = arith.constant 0 : index
    %25 = vector.load %arg11[%c0_19, %c0_20] : memref<1x128xf32, #tpu.memory_space<vmem>>, vector<1x128xf32>
    %26 = vector.broadcast %25 : vector<1x128xf32> to vector<8x128xf32>
    %27 = arith.addf %24, %26 : vector<8x128xf32>
    %28 = tpu.iota {dimensions = array<i32: 1>} : vector<8x128xi32>
    %c32_i32 = arith.constant 32 : i32
    %29 = vector.broadcast %c32_i32 : i32 to vector<8x128xi32>
    %30 = arith.cmpi slt, %28, %29 : vector<8x128xi32>
    %cst_21 = arith.constant -1.000000e+30 : f32
    %31 = vector.broadcast %cst_21 : f32 to vector<8x128xf32>
    %32 = arith.select %30, %27, %31 : vector<8x128xi1>, vector<8x128xf32>
    %cst_22 = arith.constant dense<0xFF800000> : vector<8xf32>
    %33 = vector.multi_reduction <maximumf>, %32, %cst_22 [1] : vector<8x128xf32> to vector<8xf32>
    %34 = vector.shape_cast %33 : vector<8xf32> to vector<8x1xf32>
    %35 = vector.broadcast %34 : vector<8x1xf32> to vector<8x128xf32>
    %36 = arith.subf %32, %35 : vector<8x128xf32>
    %37 = math.exp %36 : vector<8x128xf32>
    %cst_23 = arith.constant dense<0.000000e+00> : vector<8xf32>
    %38 = vector.multi_reduction <add>, %37, %cst_23 [1] : vector<8x128xf32> to vector<8xf32>
    %39 = vector.shape_cast %38 : vector<8xf32> to vector<8x1xf32>
    %40 = math.log %39 : vector<8x1xf32>
    %41 = arith.addf %34, %40 : vector<8x1xf32>
    %c0_24 = arith.constant 0 : index
    %c0_25 = arith.constant 0 : index
    %42 = vector.load %arg2[%c0_24, %c0_25] : memref<8x1xi32, #tpu.memory_space<vmem>>, vector<8x1xi32>
    %43 = vector.broadcast %42 : vector<8x1xi32> to vector<8x128xi32>
    %44 = arith.cmpi eq, %28, %43 : vector<8x128xi32>
    %45 = arith.extui %44 : vector<8x128xi1> to vector<8x128xi32>
    %46 = arith.sitofp %45 : vector<8x128xi32> to vector<8x128xf32>
    %47 = arith.mulf %46, %27 : vector<8x128xf32>
    %cst_26 = arith.constant dense<0.000000e+00> : vector<8xf32>
    %48 = vector.multi_reduction <add>, %47, %cst_26 [1] : vector<8x128xf32> to vector<8xf32>
    %49 = vector.shape_cast %48 : vector<8xf32> to vector<8x1xf32>
    %50 = arith.subf %41, %49 : vector<8x1xf32>
    %c0_27 = arith.constant 0 : index
    %c0_28 = arith.constant 0 : index
    %51 = vector.load %arg3[%c0_27, %c0_28] : memref<8x1xf32, #tpu.memory_space<vmem>>, vector<8x1xf32>
    %52 = arith.mulf %50, %51 : vector<8x1xf32>
    %c0_29 = arith.constant 0 : index
    %c0_30 = arith.constant 0 : index
    %53 = vector.load %arg13[%c0_29, %c0_30] : memref<1x1xf32, #tpu.memory_space<vmem>>, vector<1x1xf32>
    %54 = vector.shape_cast %52 : vector<8x1xf32> to vector<1x8x1xf32>
    %cst_31 = arith.constant dense<0.000000e+00> : vector<1xf32>
    %55 = vector.multi_reduction <add>, %54, %cst_31 [1, 2] : vector<1x8x1xf32> to vector<1xf32>
    %56 = vector.shape_cast %55 : vector<1xf32> to vector<1x1x1xf32>
    %57 = vector.extract %56[0, 0, 0] : f32 from vector<1x1x1xf32>
    %58 = vector.broadcast %57 : f32 to vector<1x1xf32>
    %59 = arith.addf %53, %58 : vector<1x1xf32>
    %c0_32 = arith.constant 0 : index
    %c0_33 = arith.constant 0 : index
    %60 = vector.load %arg13[%c0_32, %c0_33] : memref<1x1xf32, #tpu.memory_space<vmem>>, vector<1x1xf32>
    tpu.vector_store %arg13[%c0_32, %c0_33], %59 {strides = array<i32>} : memref<1x1xf32, #tpu.memory_space<vmem>>, vector<1x1xf32>,
    %c0_34 = arith.constant 0 : index
    %c0_35 = arith.constant 0 : index
    %61 = vector.load %arg13[%c0_34, %c0_35] : memref<1x1xf32, #tpu.memory_space<vmem>>, vector<1x1xf32>
    %cst_36 = arith.constant 1.250000e-01 : f32
    %62 = vector.broadcast %cst_36 : f32 to vector<1x1xf32>
    %63 = arith.mulf %61, %62 : vector<1x1xf32>
    %c0_37 = arith.constant 0 : index
    %c0_38 = arith.constant 0 : index
    %64 = vector.load %arg12[%c0_37, %c0_38] : memref<1x1xf32, #tpu.memory_space<vmem>>, vector<1x1xf32>
    tpu.vector_store %arg12[%c0_37, %c0_38], %63 {strides = array<i32>} : memref<1x1xf32, #tpu.memory_space<vmem>>, vector<1x1xf32>,
    return
  }
  func.func @transform_0(%arg0: i32) -> (i32, i32) {
    %c0_i32 = arith.constant 0 : i32
    %c0_i32_0 = arith.constant 0 : i32
    return %arg0, %c0_i32 : i32, i32
  }
  func.func @transform_1(%arg0: i32) -> (i32, i32) {
    %c0_i32 = arith.constant 0 : i32
    %c0_i32_0 = arith.constant 0 : i32
    return %arg0, %c0_i32 : i32, i32
  }
  func.func @transform_2(%arg0: i32) -> (i32, i32) {
    %c0_i32 = arith.constant 0 : i32
    %c0_i32_0 = arith.constant 0 : i32
    return %arg0, %c0_i32 : i32, i32
  }
  func.func @transform_3(%arg0: i32) -> (i32, i32) {
    %c0_i32 = arith.constant 0 : i32
    %c0_i32_0 = arith.constant 0 : i32
    %c0_i32_1 = arith.constant 0 : i32
    return %c0_i32, %c0_i32_0 : i32, i32
  }
  func.func @transform_4(%arg0: i32) -> (i32, i32) {
    %c0_i32 = arith.constant 0 : i32
    %c0_i32_0 = arith.constant 0 : i32
    %c0_i32_1 = arith.constant 0 : i32
    return %c0_i32, %c0_i32_0 : i32, i32
  }
  func.func @transform_5(%arg0: i32) -> (i32, i32) {
    %c0_i32 = arith.constant 0 : i32
    %c0_i32_0 = arith.constant 0 : i32
    %c0_i32_1 = arith.constant 0 : i32
    return %c0_i32, %c0_i32_0 : i32, i32
  }
  func.func @transform_6(%arg0: i32) -> (i32, i32) {
    %c0_i32 = arith.constant 0 : i32
    %c0_i32_0 = arith.constant 0 : i32
    %c0_i32_1 = arith.constant 0 : i32
    return %c0_i32, %c0_i32_0 : i32, i32
  }
  func.func @transform_7(%arg0: i32) -> (i32, i32) {
    %c0_i32 = arith.constant 0 : i32
    %c0_i32_0 = arith.constant 0 : i32
    %c0_i32_1 = arith.constant 0 : i32
    return %c0_i32, %c0_i32_0 : i32, i32
  }
  func.func @transform_8(%arg0: i32) -> (i32, i32) {
    %c0_i32 = arith.constant 0 : i32
    %c0_i32_0 = arith.constant 0 : i32
    %c0_i32_1 = arith.constant 0 : i32
    return %c0_i32, %c0_i32_0 : i32, i32
  }
  func.func @transform_9(%arg0: i32) -> (i32, i32) {
    %c0_i32 = arith.constant 0 : i32
    %c0_i32_0 = arith.constant 0 : i32
    %c0_i32_1 = arith.constant 0 : i32
    return %c0_i32, %c0_i32_0 : i32, i32
  }
  func.func @transform_10(%arg0: i32) -> (i32, i32) {
    %c0_i32 = arith.constant 0 : i32
    %c0_i32_0 = arith.constant 0 : i32
    %c0_i32_1 = arith.constant 0 : i32
    return %c0_i32, %c0_i32_0 : i32, i32
  }
  func.func @transform_11(%arg0: i32) -> (i32, i32) {
    %c0_i32 = arith.constant 0 : i32
    %c0_i32_0 = arith.constant 0 : i32
    %c0_i32_1 = arith.constant 0 : i32
    return %c0_i32, %c0_i32_0 : i32, i32
  }
}

</mosaic_0001>

<bundles_post_ra>
// kernel: tpu_custom_call.1
= control target key start
LH: loop header
LB: loop body
LE: loop exit
PB: predicated region body
PF: predicated region fallthrough
CT: control target
= control target key end

     0   :  { %16 = vsyncpa [#allocation4], 0  ;;  %s1155_s0 = inlined_call_operand.vmem [shape: f32[8,128], index: 0, kind: input, shape index: {}]   ;;  %s1156_s1 = inlined_call_operand.vmem [shape: s32[8,1], index: 1, kind: input, shape index: {}]   ;;  %s1157_s2 = inlined_call_operand.vmem [shape: f32[8,1], index: 2, kind: input, shape index: {}]   ;;  %s1158_s3 = inlined_call_operand.hbm [shape: bf16[128,128], index: 3, kind: input, shape index: {}]   ;;  %s1159_s4 = inlined_call_operand.vmem [shape: f32[1,128], index: 4, kind: input, shape index: {}]   ;;  %s1160_s5 = inlined_call_operand.hbm [shape: bf16[128,128], index: 5, kind: input, shape index: {}]   ;;  %s1161_s6 = inlined_call_operand.vmem [shape: f32[1,128], index: 6, kind: input, shape index: {}]   ;;  %s1162_s7 = inlined_call_operand.hbm [shape: bf16[128,128], index: 7, kind: input, shape index: {}]   ;;  %s1163_s8 = inlined_call_operand.vmem [shape: f32[1,128], index: 8, kind: input, shape index: {}]   ;;  %s1164_s9 = inlined_call_operand.hbm [shape: bf16[128,128], index: 9, kind: input, shape index: {}]   ;;  %s1165_s10 = inlined_call_operand.vmem [shape: f32[1,128], index: 10, kind: input, shape index: {}]   ;;  %s1166_s11 = inlined_call_operand.hbm [shape: f32[1,1], index: 11, kind: output, shape index: {}]  }
   0x1   :  { %17 = vsyncpa [#allocation7], 0 }
   0x2   :  { %18 = vsyncpa [#allocation10], 0 }
   0x3   :  { %19 = vsyncpa [#allocation5], 0  ;;  %s933_s17 = smov [#allocation6]   ;;  %s934_s19 = smov [#allocation3]  }
   0x4   :  { %s45_s18 = sshll.u32 %s933_s17, 4  ;;  %s31_s20 = sshll.u32 %s934_s19, 4  ;;  %s46_s18 = int_to_ptr.vmem [resolvable:$true] %s45_s18  ;;  %s1003_s20 = int_to_ptr.vmem [resolvable:$true] %s31_s20 }
   0x5   :  { %s815_s23 = scalar_lea.hbm %s1160_s5, 1024 }
   0x6   :  { %p816_p0 = scmp.ne.s32.totalorder %s1160_s5, %s815_s23  ;;  %p819_p1 = scmp.lt.u32.totalorder %s815_s23, %s1160_s5 }
   0x8   :  { %p821_p2 = pnand %p819_p1, %p816_p0 }
   0xa   :  { %824 = shalt.err (!%p821_p2)
}
   0xb   :  { %s825_s28 = scalar_lea.vmem %s46_s18, 1024  ;;  %p830_p4 = scmp.lt.s32.totalorder %s46_s18, %s46_s18 }
   0xc   :  { %p826_p3 = scmp.ne.s32.totalorder %s46_s18, %s825_s28  ;;  %p831_p5 = scmp.lt.s32.totalorder %s825_s28, %s825_s28 }
   0xe   :  { %p832_p6 = por %p831_p5, %p830_p4 }
  0x10   :  { %p833_p7 = pnand %p832_p6, %p826_p3 }
  0x12   :  { %836 = shalt.err (!%p833_p7)
}
  0x13   :  { %s935_s29 = smov 64   ;;  %s936_s30 = smov 4  }
  0x14   :  { %51 = dma.hbm_to_vmem [thread:$0]  %s1160_s5, 1024, %s46_s18, [#allocation7], %s935_s29, %s935_s29, %s936_s30  }
  0x15   :  { %s837_s16 = scalar_lea.hbm %s1158_s3, 1024 }
  0x16   :  { %p838_p8 = scmp.ne.s32.totalorder %s1158_s3, %s837_s16  ;;  %p841_p9 = scmp.lt.u32.totalorder %s837_s16, %s1158_s3 }
  0x18   :  { %p843_p10 = pnand %p841_p9, %p838_p8 }
  0x1a   :  { %846 = shalt.err (!%p843_p10)
}
  0x1b   :  { %s847_s23 = scalar_lea.vmem %s1003_s20, 1024  ;;  %p852_p12 = scmp.lt.s32.totalorder %s1003_s20, %s1003_s20 }
  0x1c   :  { %p848_p11 = scmp.ne.s32.totalorder %s1003_s20, %s847_s23  ;;  %p853_p13 = scmp.lt.s32.totalorder %s847_s23, %s847_s23 }
  0x1e   :  { %p854_p0 = por %p853_p13, %p852_p12 }
  0x20   :  { %p855_p1 = pnand %p854_p0, %p848_p11 }
  0x22   :  { %858 = shalt.err (!%p855_p1)
}
  0x23   :  { %37 = dma.hbm_to_vmem [thread:$0]  %s1158_s3, 1024, %s1003_s20, [#allocation4], %s935_s29, %s935_s29, %s936_s30  }
  0x24   :  { %s937_s24 = smov [#allocation8]   ;;  %s938_s26 = smov [#allocation9]  }
  0x25   :  { %s59_s25 = sshll.u32 %s937_s24, 4  ;;  %s73_s27 = sshll.u32 %s938_s26, 4  ;;  %s60_s25 = int_to_ptr.vmem [resolvable:$true] %s59_s25  ;;  %s1040_s27 = int_to_ptr.vmem [resolvable:$true] %s73_s27 }
  0x26   :  { %s859_s13 = scalar_lea.hbm %s1162_s7, 1024 }
  0x27   :  { %p860_p2 = scmp.ne.s32.totalorder %s1162_s7, %s859_s13  ;;  %p863_p3 = scmp.lt.u32.totalorder %s859_s13, %s1162_s7 }
  0x29   :  { %p865_p4 = pnand %p863_p3, %p860_p2 }
  0x2b   :  { %868 = shalt.err (!%p865_p4)
}
  0x2c   :  { %s869_s3 = scalar_lea.vmem %s60_s25, 1024  ;;  %p874_p6 = scmp.lt.s32.totalorder %s60_s25, %s60_s25 }
  0x2d   :  { %p870_p5 = scmp.ne.s32.totalorder %s60_s25, %s869_s3  ;;  %p875_p7 = scmp.lt.s32.totalorder %s869_s3, %s869_s3 }
  0x2f   :  { %p876_p8 = por %p875_p7, %p874_p6 }
  0x31   :  { %p877_p9 = pnand %p876_p8, %p870_p5 }
  0x33   :  { %880 = shalt.err (!%p877_p9)
}
  0x34   :  { %65 = dma.hbm_to_vmem [thread:$0]  %s1162_s7, 1024, %s60_s25, [#allocation7], %s935_s29, %s935_s29, %s936_s30  }
  0x35   :  { %s881_s23 = scalar_lea.hbm %s1164_s9, 1024 }
  0x36   :  { %p882_p10 = scmp.ne.s32.totalorder %s1164_s9, %s881_s23  ;;  %p885_p11 = scmp.lt.u32.totalorder %s881_s23, %s1164_s9 }
  0x38   :  { %p887_p12 = pnand %p885_p11, %p882_p10 }
  0x3a   :  { %890 = shalt.err (!%p887_p12)
}
  0x3b   :  { %s891_s28 = scalar_lea.vmem %s1040_s27, 1024  ;;  %p896_p0 = scmp.lt.s32.totalorder %s1040_s27, %s1040_s27 }
  0x3c   :  { %p892_p13 = scmp.ne.s32.totalorder %s1040_s27, %s891_s28  ;;  %p897_p1 = scmp.lt.s32.totalorder %s891_s28, %s891_s28 }
  0x3e   :  { %p898_p2 = por %p897_p1, %p896_p0 }
  0x40   :  { %p899_p3 = pnand %p898_p2, %p892_p13 }
  0x42   :  { %902 = shalt.err (!%p899_p3)
}
  0x43   :  { %79 = dma.hbm_to_vmem [thread:$0]  %s1164_s9, 1024, %s1040_s27, [#allocation10], %s935_s29, %s935_s29, %s936_s30  }
  0x44   :  { %925 = dma.done.wait [#allocation4], 1024  }
  0x45   :  { %926 = vsyncadd [#allocation4], 4294966272 }
  0x46   :  { %927 = dma.done.wait [#allocation7], 2048  }
  0x47   :  { %928 = vsyncadd [#allocation7], 4294965248 }
  0x48   :  { %929 = dma.done.wait [#allocation10], 1024  }
  0x49   :  { %930 = vsyncadd [#allocation10], 4294966272  ;;  %v939_v0 = vmov 0.0   ;;  %vm940_vm0 = vmmov 0   ;;  %v779_v1 = vld [vmem:[#allocation3] sm:$0xff]   ;;  %v780_v2 = vld [vmem:[#allocation3 + $0x8] sm:$0xff]   ;;  %v550_v57 = vlaneseq }
  0x4a   :  { %686 = vmatprep.subr.bf16.mxu0 %v939_v0  ;;  %702 = vmatprep.mubr.msk.bf16.mxu0 %vm940_vm0, %v939_v0  ;;  %v781_v3 = vld [vmem:[#allocation3 + $0x10] sm:$0xff]   ;;  %v787_v4 = vld [vmem:[#allocation6] sm:$0xff]   ;;  %v782_v5 = vld [vmem:[#allocation3 + $0x18] sm:$0xff]   ;;  %v941_v56 = vmov 0   ;;  %vm578_vm3 = vcmask 7168   ;;  %vm99_vm4 = vcmask 0  }
  0x4b   :  { %706 = vmatprep.subr.bf16.mxu1 %v939_v0  ;;  %722 = vmatprep.mubr.msk.bf16.mxu1 %vm940_vm0, %v939_v0  ;;  %v788_v6 = vld [vmem:[#allocation6 + $0x8] sm:$0xff]   ;;  %v783_v7 = vld [vmem:[#allocation3 + $0x20] sm:$0xff]   ;;  %v789_v8 = vld [vmem:[#allocation6 + $0x10] sm:$0xff]   ;;  %v551_v58 = vand.u32 127, %v550_v57  ;;  %100 = vst.msk [vmem:[#allocation2] sm:$0x1] %vm99_vm4, %v939_v0 }
  0x4c   :  { %687 = vmatpush3.bf16.msra.mxu0 %v779_v1  ;;  %707 = vmatpush3.bf16.msra.mxu1 %v787_v4  ;;  %v784_v9 = vld [vmem:[#allocation3 + $0x28] sm:$0xff]   ;;  %v790_v10 = vld [vmem:[#allocation6 + $0x18] sm:$0xff]   ;;  %v785_v11 = vld [vmem:[#allocation3 + $0x30] sm:$0xff]  }
  0x4d   :  { %688 = vmatprep.subr.bf16.mxu0 %v939_v0  ;;  %708 = vmatprep.subr.bf16.mxu1 %v939_v0  ;;  %v791_v12 = vld [vmem:[#allocation6 + $0x20] sm:$0xff]   ;;  %v786_v13 = vld [vmem:[#allocation3 + $0x38] sm:$0xff]   ;;  %v792_v15 = vld [vmem:[#allocation6 + $0x28] sm:$0xff]   ;;  %vm552_vm1 = vcmp.lt.s32.totalorder %v551_v58, 32 }
  0x4e   :  { %v101_v14 = vld [vmem:[%s1155_s0] sm:$0xff]  ;;  %v793_v17 = vld [vmem:[#allocation6 + $0x30] sm:$0xff]   ;;  %v796_v20 = vld [vmem:[#allocation8 + $0x8] sm:$0xff]   ;;  %778 = vset.pattern.permute.xlu0 %v941_v56 }
  0x4f   :  { %v102_v16 = vpack.c.bf16 %v101_v14, %v101_v14  ;;  %v794_v18 = vld [vmem:[#allocation6 + $0x38] sm:$0xff]   ;;  %v795_v19 = vld [vmem:[#allocation8] sm:$0xff]   ;;  %v797_v21 = vld [vmem:[#allocation8 + $0x10] sm:$0xff]  }
  0x50   :  { %689 = vmatpush3.bf16.msra.mxu0 %v780_v2  ;;  %709 = vmatpush3.bf16.msra.mxu1 %v788_v6  ;;  %v798_v22 = vld [vmem:[#allocation8 + $0x18] sm:$0xff]   ;;  %v799_v23 = vld [vmem:[#allocation8 + $0x20] sm:$0xff]   ;;  %v800_v24 = vld [vmem:[#allocation8 + $0x28] sm:$0xff]  }
  0x51   :  { %690 = vmatprep.subr.bf16.mxu0 %v939_v0  ;;  %710 = vmatprep.subr.bf16.mxu1 %v939_v0  ;;  %v801_v25 = vld [vmem:[#allocation8 + $0x30] sm:$0xff]   ;;  %v613_v26 = vld [vmem:[%s1159_s4] ss:$0 sm:$0xff]  ;;  %v803_v34 = vld [vmem:[#allocation9] sm:$0xff]  }
  0x52   :  { %v802_v33 = vld [vmem:[#allocation8 + $0x38] sm:$0xff]   ;;  %v804_v35 = vld [vmem:[#allocation9 + $0x8] sm:$0xff]   ;;  %v805_v36 = vld [vmem:[#allocation9 + $0x10] sm:$0xff]  }
  0x53   :  { %v806_v37 = vld [vmem:[#allocation9 + $0x18] sm:$0xff]   ;;  %v807_v38 = vld [vmem:[#allocation9 + $0x20] sm:$0xff]   ;;  %v808_v39 = vld [vmem:[#allocation9 + $0x28] sm:$0xff]  }
  0x54   :  { %691 = vmatpush3.bf16.msra.mxu0 %v781_v3  ;;  %711 = vmatpush3.bf16.msra.mxu1 %v789_v8  ;;  %v809_v40 = vld [vmem:[#allocation9 + $0x30] sm:$0xff]   ;;  %v622_v41 = vld [vmem:[%s1161_s6] ss:$0 sm:$0xff] }
  0x55   :  { %692 = vmatprep.subr.bf16.mxu0 %v939_v0  ;;  %712 = vmatprep.subr.bf16.mxu1 %v939_v0  ;;  %v810_v48 = vld [vmem:[#allocation9 + $0x38] sm:$0xff]  }
  0x56   :  { %v631_v49 = vld [vmem:[%s1163_s8] ss:$0 sm:$0xff] }
  0x57   :  { %v640_v59 = vld [vmem:[%s1165_s10] ss:$0 sm:$0xff] }
  0x58   :  { %693 = vmatpush3.bf16.msra.mxu0 %v782_v5  ;;  %713 = vmatpush3.bf16.msra.mxu1 %v790_v10  ;;  %v564_v3 = vld [vmem:[%s1156_s1] sm:$0xff] }
  0x59   :  { %694 = vmatprep.subr.bf16.mxu0 %v939_v0  ;;  %714 = vmatprep.subr.bf16.mxu1 %v939_v0 }
  0x5c   :  { %695 = vmatpush3.bf16.msra.mxu0 %v783_v7  ;;  %715 = vmatpush3.bf16.msra.mxu1 %v791_v12 }
  0x5d   :  { %696 = vmatprep.subr.bf16.mxu0 %v939_v0  ;;  %716 = vmatprep.subr.bf16.mxu1 %v939_v0 }
  0x60   :  { %697 = vmatpush3.bf16.msra.mxu0 %v784_v9  ;;  %717 = vmatpush3.bf16.msra.mxu1 %v792_v15 }
  0x61   :  { %698 = vmatprep.subr.bf16.mxu0 %v939_v0  ;;  %718 = vmatprep.subr.bf16.mxu1 %v939_v0 }
  0x64   :  { %699 = vmatpush3.bf16.msra.mxu0 %v785_v11  ;;  %719 = vmatpush3.bf16.msra.mxu1 %v793_v17 }
  0x65   :  { %700 = vmatprep.subr.bf16.mxu0 %v939_v0  ;;  %720 = vmatprep.subr.bf16.mxu1 %v939_v0 }
  0x68   :  { %701 = vmatpush3.bf16.msra.mxu0 %v786_v13  ;;  %721 = vmatpush3.bf16.msra.mxu1 %v794_v18 }
  0x69   :  { %726 = vmatprep.subr.bf16.mxu0 %v939_v0  ;;  %746 = vmatprep.subr.bf16.mxu1 %v939_v0 }
  0x6b   :  { %703 = vmatmul.mubr.bf16.vlgmr.msra.gmra.mrb[0].mxu0 %v102_v16  ;;  %v575_v16 = vld [vmem:[%s1157_s2] sm:$0xff]  ;;  %s942_s2 = smov [#allocation11]  }
  0x6c   :  { %742 = vmatprep.mubr.msk.bf16.mxu0 %vm940_vm0, %v939_v0  ;;  %727 = vmatpush3.bf16.msra.mxu0 %v795_v19  ;;  %s602_s17 = sshll.u32 %s942_s2, 4  ;;  %s603_s17 = int_to_ptr.vmem [resolvable:$true] %s602_s17 }
  0x6d   :  { %728 = vmatprep.subr.bf16.mxu0 %v939_v0  ;;  %s903_s3 = scalar_lea.vmem %s603_s17, 16  ;;  %s907_s20 = scalar_lea.vmem %s603_s17, 32 }
  0x6e   :  { %p904_p4 = scmp.ne.s32.totalorder %s603_s17, %s903_s3  ;;  %p908_p5 = scmp.lt.s32.totalorder %s603_s17, %s603_s17 }
  0x6f   :  { %p909_p6 = scmp.lt.s32.totalorder %s907_s20, %s903_s3 }
  0x70   :  { %729 = vmatpush3.bf16.msra.mxu0 %v796_v20 }
  0x71   :  { %730 = vmatprep.subr.bf16.mxu0 %v939_v0  ;;  %p910_p7 = por %p909_p6, %p908_p5 }
  0x73   :  { %p911_p8 = pnand %p910_p7, %p904_p4 }
  0x74   :  { %731 = vmatpush3.bf16.msra.mxu0 %v797_v21 }
  0x75   :  { %732 = vmatprep.subr.bf16.mxu0 %v939_v0 }
  0x78   :  { %733 = vmatpush3.bf16.msra.mxu0 %v798_v22 }
  0x79   :  { %734 = vmatprep.subr.bf16.mxu0 %v939_v0 }
  0x7c   :  { %735 = vmatpush3.bf16.msra.mxu0 %v799_v23 }
  0x7d   :  { %736 = vmatprep.subr.bf16.mxu0 %v939_v0 }
  0x80   :  { %737 = vmatpush3.bf16.msra.mxu0 %v800_v24 }
  0x81   :  { %738 = vmatprep.subr.bf16.mxu0 %v939_v0 }
  0x84   :  { %739 = vmatpush3.bf16.msra.mxu0 %v801_v25 }
  0x85   :  { %740 = vmatprep.subr.bf16.mxu0 %v939_v0 }
  0x88   :  { %741 = vmatpush3.bf16.msra.mxu0 %v802_v33 }
 0x13e   :  { %v208_v27 = vpop.f32.mrb[0].mxu0 }
 0x13f   :  { %v209_v28 = vadd.f32 %v613_v26, %v208_v27  ;;  %v704_v29 = vpop.f32.mrb[1].mxu0  ;;  %v577_v27 = vld [vmem:[#allocation2] sm:$0x1] }
 0x140   :  { %v211_v30 = vpop.f32.mrb[2].mxu0 }
 0x141   :  { %v214_v31 = vpack.c.bf16 %v209_v28, %v209_v28  ;;  %v705_v32 = vpop.f32.mrb[3].mxu0 }
 0x143   :  { %723 = vmatmul.mubr.bf16.vlgmr.msra.gmra.mrb[0].mxu1 %v214_v31 }
 0x144   :  { %762 = vmatprep.mubr.msk.bf16.mxu1 %vm940_vm0, %v939_v0  ;;  %747 = vmatpush3.bf16.msra.mxu1 %v803_v34 }
 0x145   :  { %748 = vmatprep.subr.bf16.mxu1 %v939_v0 }
 0x148   :  { %749 = vmatpush3.bf16.msra.mxu1 %v804_v35 }
 0x149   :  { %750 = vmatprep.subr.bf16.mxu1 %v939_v0 }
 0x14c   :  { %751 = vmatpush3.bf16.msra.mxu1 %v805_v36 }
 0x14d   :  { %752 = vmatprep.subr.bf16.mxu1 %v939_v0 }
 0x150   :  { %753 = vmatpush3.bf16.msra.mxu1 %v806_v37 }
 0x151   :  { %754 = vmatprep.subr.bf16.mxu1 %v939_v0 }
 0x154   :  { %755 = vmatpush3.bf16.msra.mxu1 %v807_v38 }
 0x155   :  { %756 = vmatprep.subr.bf16.mxu1 %v939_v0 }
 0x158   :  { %757 = vmatpush3.bf16.msra.mxu1 %v808_v39 }
 0x159   :  { %758 = vmatprep.subr.bf16.mxu1 %v939_v0 }
 0x15c   :  { %759 = vmatpush3.bf16.msra.mxu1 %v809_v40 }
 0x15d   :  { %760 = vmatprep.subr.bf16.mxu1 %v939_v0 }
 0x160   :  { %761 = vmatpush3.bf16.msra.mxu1 %v810_v48 }
 0x216   :  { %v320_v42 = vpop.f32.mrb[0].mxu1 }
 0x217   :  { %v321_v43 = vadd.f32 %v622_v41, %v320_v42  ;;  %v724_v44 = vpop.f32.mrb[1].mxu1 }
 0x218   :  { %v323_v45 = vpop.f32.mrb[2].mxu1 }
 0x219   :  { %v326_v46 = vpack.c.bf16 %v321_v43, %v321_v43  ;;  %v725_v47 = vpop.f32.mrb[3].mxu1 }
 0x21b   :  { %743 = vmatmul.mubr.bf16.vlgmr.msra.gmra.mrb[4].mxu0 %v326_v46 }
 0x2ee   :  { %v432_v50 = vpop.f32.mrb[4].mxu0 }
 0x2ef   :  { %v433_v51 = vadd.f32 %v631_v49, %v432_v50  ;;  %v744_v52 = vpop.f32.mrb[5].mxu0 }
 0x2f0   :  { %v435_v53 = vpop.f32.mrb[6].mxu0 }
 0x2f1   :  { %v438_v54 = vpack.c.bf16 %v433_v51, %v433_v51  ;;  %v745_v55 = vpop.f32.mrb[7].mxu0 }
 0x2f3   :  { %763 = vmatmul.mubr.bf16.vlgmr.msra.gmra.mrb[4].mxu1 %v438_v54 }
 0x3c6   :  { %v544_v60 = vpop.f32.mrb[4].mxu1 }
 0x3c7   :  { %v545_v61 = vadd.f32 %v640_v59, %v544_v60  ;;  %v764_v62 = vpop.f32.mrb[5].mxu1 }
 0x3c8   :  { %v547_v63 = vpop.f32.mrb[6].mxu1 }
 0x3c9   :  { %v765_v1 = vpop.f32.mrb[7].mxu1  ;;  %v553_v2 = vsel %vm552_vm1, %v545_v61, -1e+30 }
 0x3ca   :  { %554 = vmax.xlane.f32.xlu0 %v553_v2 }
 0x3e0   :  { %566 = vperm.xlu0 %778, %v564_v3  }
 0x457   :  { %v555_v4 = vpop.xlane.xlu0 %554 }
 0x458   :  { %v556_v5 = vsub.f32 %v553_v2, %v555_v4 }
 0x45a   :  { %v557_v6 = vmul.f32 1.442695, %v556_v5 }
 0x45c   :  { %811 = vpow2.f32 %v557_v6 }
 0x45f   :  { %v567_v7 = vpop.permute.xlu0 %566 }
 0x460   :  { %vm568_vm2 = vcmp.eq.s32.totalorder %v551_v58, %v567_v7 }
 0x461   :  { %v649_v9 = vsel %vm568_vm2, 1.0, %v939_v0 }
 0x462   :  { %v571_v10 = vmul.f32 %v649_v9, %v545_v61 }
 0x466   :  { %v812_v8 = vpop.eup %811 }
 0x467   :  { %559 = vadd.xlane.f32.xlu1 %v812_v8 }
 0x46b   :  { %572 = vadd.xlane.f32.xlu1 %v571_v10 }
 0x4f4   :  { %v560_v11 = vpop.xlane.xlu1 %559 }
 0x4f5   :  { %813 = vlog2.f32 %v560_v11 }
 0x4f8   :  { %v573_v15 = vpop.xlane.xlu1 %572 }
 0x4ff   :  { %v814_v12 = vpop.eup %813 }
 0x500   :  { %v562_v13 = vmul.f32 0.6931472, %v814_v12 }
 0x502   :  { %v563_v14 = vadd.f32 %v562_v13, %v555_v4 }
 0x504   :  { %v574_v17 = vsub.f32 %v563_v14, %v573_v15 }
 0x506   :  { %v576_v18 = vmul.f32 %v575_v16, %v574_v17 }
 0x508   :  { %v579_v19 = vsel %vm578_vm3, %v576_v18, 0.0 }
 0x509   :  { %580 = vadd.xlane.f32.xlu1 %v579_v19 }
 0x596   :  { %v581_v20 = vpop.xlane.xlu1 %580 }
 0x597   :  { %v582_v21 = vrot.slane %v581_v20, 4 }
 0x599   :  { %v583_v22 = vadd.f32 %v582_v21, %v581_v20 }
 0x59b   :  { %v584_v23 = vrot.slane %v583_v22, 2 }
 0x59d   :  { %v585_v24 = vadd.f32 %v584_v23, %v583_v22 }
 0x59f   :  { %v586_v25 = vrot.slane %v585_v24, 1 }
 0x5a1   :  { %v587_v26 = vadd.f32 %v586_v25, %v585_v24 }
 0x5a3   :  { %766 = vpush %v587_v26 }
 0x5d4   :  { %s767_s16 = spop %766 }
 0x5d5   :  { %v589_v28 = vstv %s767_s16 }
 0x5d6   :  { %v590_v29 = vadd.f32 %v589_v28, %v577_v27 }
 0x5d8   :  { %592 = vst.msk [vmem:[#allocation2] sm:$0x1] %vm99_vm4, %v590_v29 }
 0x5df   :  { %v593_v30 = vld [vmem:[#allocation2] sm:$0x1] }
 0x5e0   :  { %v594_v31 = vmul.f32 0.125, %v593_v30 }
 0x5e2   :  { %595 = vst.msk [vmem:[#allocation11] sm:$0x1] %vm99_vm4, %v594_v31 }
 0x5e3   :  { %914 = shalt.err (!%p911_p8)
}
 0x5e4   :  { %s915_s22 = scalar_lea.hbm %s1166_s11, 16 }
 0x5e5   :  { %p916_p9 = scmp.ne.s32.totalorder %s1166_s11, %s915_s22  ;;  %p919_p10 = scmp.lt.u32.totalorder %s915_s22, %s1166_s11 }
 0x5e7   :  { %p921_p11 = pnand %p919_p10, %p916_p9 }
 0x5e9   :  { %924 = shalt.err (!%p921_p11)
}
 0x5ea   :  { %605 = dma.vmem_to_hbm [thread:$0]  %s603_s17, 16, %s1166_s11, [#allocation5]  }
 0x5eb   :  { %931 = dma.done.wait [#allocation5], 16  }
 0x5ec   :  { %932 = vsyncadd [#allocation5], 4294967280 }
 0x5ed   :  { %609 = vsyncpa [#allocation4], 1 }
 0x5ee   :  { %610 = vsyncpa [#allocation7], 1 }
 0x5ef   :  { %611 = vsyncpa [#allocation10], 1 }
 0x5f0   :  { %612 = vsyncpa [#allocation5], 1 }

</bundles_post_ra>
